<compile_context>
chip_gen: v6e
topology: v6e:2x2x1
jax: 0.10.0
libtpu: 0.0.40
codegen_flags: <defaults>
</compile_context>

<pallas_src>
import jax
import jax.numpy as jnp
from jax.experimental import pallas as pl
from jax.experimental.pallas import tpu as pltpu


def _round_up(x, m):
    return (x + m - 1) // m * m


def _vmem_capacity_bytes():
    try:
        return int(pltpu.get_tpu_info().vmem_capacity_bytes)
    except Exception:
        return 64 * 1024 * 1024  # safe lower bound (v7x per-TC VMEM)


def ffn_residual_kernel(x_ref, w1_ref, b1_ref, w2_ref, b2_ref, o_ref):
    # x_ref: (tm, D_in) f32 row tile; W1/W2 full-resident bf16; biases f32 (1, D).
    x = x_ref[...]                                    # f32, kept for the residual
    xc = x.astype(w1_ref.dtype)                       # bf16 operand for the MXU
    h = jnp.dot(xc, w1_ref[...],
                preferred_element_type=jnp.float32) + b1_ref[...]
    # Dropout(p=0) is identity. ReLU in f32 (v5e VPU has no bf16), then cast for matmul-2.
    h = jnp.maximum(h, 0.0).astype(w2_ref.dtype)
    y = jnp.dot(h, w2_ref[...],
                preferred_element_type=jnp.float32) + b2_ref[...]
    o_ref[...] = (x + y).astype(o_ref.dtype)          # residual add in f32


def encoder_ffn_residual(x2d, w1_t, b1, w2_t, b2, *, tm_max=512):
    """out = x + ReLU(x @ W1 + b1) @ W2 + b2.

    x2d:  (M, D_in) f32, features on the lane axis.
    w1_t: (D_in, D_ff) bf16  (nn.Linear weight pre-transposed, cast once at init)
    w2_t: (D_ff, D_in) bf16
    b1:   (1, D_ff) f32,  b2: (1, D_in) f32
    """
    M, D_in = x2d.shape
    D_ff = w1_t.shape[1]
    w_itemsize = jnp.dtype(w1_t.dtype).itemsize

    # --- VMEM budget (per-TC capacity minus headroom) ------------------------------
    vmem_cap = _vmem_capacity_bytes()
    budget = max(16 * 1024 * 1024, vmem_cap - 8 * 1024 * 1024)
    w_bytes = (D_in * D_ff + D_ff * D_in) * w_itemsize          # single-buffered
    bias_bytes = (D_ff + D_in) * 4
    # Per-row VMEM: x/out f32 double-buffered + h (f32 + bf16) + xc/y temporaries.
    row_bytes = 4 * D_in * 4 + D_ff * (4 + w_itemsize) + D_in * (4 + w_itemsize)
    tm_fit = ((budget // 2 - w_bytes - bias_bytes) // max(row_bytes, 1)) // 8 * 8
    tm_max = max(8, min(tm_max, int(tm_fit)))

    # --- Row tiling: pad rows only to a multiple of 8, keep >= 2 grid steps --------
    M8 = _round_up(max(M, 1), 8)
    grid_m = int(pl.cdiv(M8, tm_max))
    if grid_m == 1 and M8 >= 16:
        grid_m = 2            # keep both v7x TensorCores busy; harmless on v5e/v6e
    tm = _round_up(int(pl.cdiv(M8, grid_m)), 8)
    M_p = tm * grid_m

    xp = x2d if M_p == M else jnp.pad(x2d, ((0, M_p - M), (0, 0)))

    # --- Advisory cost + VMEM limit (no 2x hedge: weights single-buffered) ---------
    io_bytes = 2 * M_p * D_in * 4                     # x in + out, f32
    cost = pl.CostEstimate(flops=4 * M_p * D_in * D_ff,
                           transcendentals=0,
                           bytes_accessed=w_bytes + io_bytes + bias_bytes)
    vmem_need = w_bytes + bias_bytes + tm * row_bytes
    vmem_limit = int(min(budget, max(vmem_need + (4 << 20), 16 << 20)))

    def _call(single_buffer_weights):
        resident = (dict(pipeline_mode=pl.Buffered(1))
                    if single_buffer_weights else {})
        grid_spec = pltpu.PrefetchScalarGridSpec(
            num_scalar_prefetch=0,
            grid=(grid_m,),
            in_specs=[
                pl.BlockSpec((tm, D_in), lambda i: (i, 0)),                # x row tile
                pl.BlockSpec((D_in, D_ff), lambda i: (0, 0), **resident),  # W1 resident
                pl.BlockSpec((1, D_ff), lambda i: (0, 0), **resident),     # b1
                pl.BlockSpec((D_ff, D_in), lambda i: (0, 0), **resident),  # W2 resident
                pl.BlockSpec((1, D_in), lambda i: (0, 0), **resident),     # b2
            ],
            out_specs=pl.BlockSpec((tm, D_in), lambda i: (i, 0)),
        )
        out = pl.pallas_call(
            ffn_residual_kernel,
            out_shape=jax.ShapeDtypeStruct((M_p, D_in), x2d.dtype),
            grid_spec=grid_spec,
            compiler_params=pltpu.CompilerParams(
                dimension_semantics=("parallel",),
                vmem_limit_bytes=vmem_limit),
            cost_estimate=cost,
        )(xp, w1_t, b1, w2_t, b2)
        return jax.block_until_ready(out)

    try:
        out = _call(True)
    except Exception:
        # Fallback if this jax build rejects Buffered(1) for constant-index operands.
        out = _call(False)

    return out if M_p == M else out[:M]


def init_params(key, input_dim, dim_feedforward, dtype=jnp.float32):
    """Deterministic init mirroring nn.Linear's U(-1/sqrt(fan_in), 1/sqrt(fan_in))."""
    k1, k2, k3, k4 = jax.random.split(key, 4)
    bound1 = 1.0 / (input_dim ** 0.5)
    bound2 = 1.0 / (dim_feedforward ** 0.5)
    # PyTorch stores W as (out, in); keep transposed (in, out) for the kernel.
    w1_t = jax.random.uniform(k1, (input_dim, dim_feedforward), dtype,
                              minval=-bound1, maxval=bound1)
    b1 = jax.random.uniform(k2, (1, dim_feedforward), dtype,
                            minval=-bound1, maxval=bound1)
    w2_t = jax.random.uniform(k3, (dim_feedforward, input_dim), dtype,
                              minval=-bound2, maxval=bound2)
    b2 = jax.random.uniform(k4, (1, input_dim), dtype,
                            minval=-bound2, maxval=bound2)
    return w1_t, b1, w2_t, b2


def prepare_params(w1_t, b1, w2_t, b2, compute_dtype=jnp.bfloat16):
    """One-time cast of the matmul operands to bf16 (hoisted out of the call path)."""
    return (w1_t.astype(compute_dtype), b1.astype(jnp.float32),
            w2_t.astype(compute_dtype), b2.astype(jnp.float32))


if __name__ == "__main__":
    # Small but non-degenerate: M = batch*seq = 512 -> 2 grid steps (tm=256), no padding.
    batch, seq, input_dim, dim_feedforward = 2, 256, 32, 64

    key = jax.random.PRNGKey(0)
    kx, kp = jax.random.split(key)
    x = jax.random.normal(kx, (batch, seq, input_dim), dtype=jnp.float32)
    w1_f32, b1_f32, w2_f32, b2_f32 = init_params(kp, input_dim, dim_feedforward)
    w1_t, b1, w2_t, b2 = prepare_params(w1_f32, b1_f32, w2_f32, b2_f32)

    # nn.Linear acts on the last axis; flatten leading dims.
    x2d = x.reshape(batch * seq, input_dim)
    out2d = encoder_ffn_residual(x2d, w1_t, b1, w2_t, b2)
    out = out2d.reshape(batch, seq, input_dim)
    jax.block_until_ready(out)

    # Reference with the same bf16 operand rounding and f32 accumulation.
    hi = jax.lax.Precision.HIGHEST
    xb = x2d.astype(jnp.bfloat16).astype(jnp.float32)
    w1f = w1_t.astype(jnp.float32)
    w2f = w2_t.astype(jnp.float32)
    h_ref = jnp.maximum(jnp.dot(xb, w1f, precision=hi) + b1, 0.0)
    h_ref = h_ref.astype(jnp.bfloat16).astype(jnp.float32)
    ref = x2d + jnp.dot(h_ref, w2f, precision=hi) + b2
    err = float(jnp.max(jnp.abs(out2d - ref)))
    assert jnp.allclose(out2d, ref, atol=1e-3, rtol=1e-3), err

    print("KERNEL_OK")
</pallas_src>

<mosaic_0001>
module attributes {stable_mosaic.version = 11 : i64} {
  func.func @ffn_residual_kernel(%arg0: i32, %arg1: memref<256x32xf32, #tpu.memory_space<vmem>>, %arg2: memref<32x64xbf16, #tpu.memory_space<vmem>>, %arg3: memref<1x64xf32, #tpu.memory_space<vmem>>, %arg4: memref<64x32xbf16, #tpu.memory_space<vmem>>, %arg5: memref<1x32xf32, #tpu.memory_space<vmem>>, %arg6: memref<256x32xf32, #tpu.memory_space<vmem>>) attributes {dimension_semantics = [#tpu.dimension_semantics<parallel>], iteration_bounds = array<i64: 2>, scalar_prefetch = 0 : i64, scratch_operands = 0 : i64, tpu.core_type = #tpu.core_type<tc>, window_params = [{transform_indices = @transform_0, window_bounds = array<i64: 256, 32>}, {pipeline_mode = #tpu.pipeline_mode<synchronous>, transform_indices = @transform_1, window_bounds = array<i64: 32, 64>}, {pipeline_mode = #tpu.pipeline_mode<synchronous>, transform_indices = @transform_2, window_bounds = array<i64: 1, 64>}, {pipeline_mode = #tpu.pipeline_mode<synchronous>, transform_indices = @transform_3, window_bounds = array<i64: 64, 32>}, {pipeline_mode = #tpu.pipeline_mode<synchronous>, transform_indices = @transform_4, window_bounds = array<i64: 1, 32>}, {transform_indices = @transform_5, window_bounds = array<i64: 256, 32>}]} {
    %c0 = arith.constant 0 : index
    %c0_0 = arith.constant 0 : index
    %0 = vector.load %arg1[%c0, %c0_0] : memref<256x32xf32, #tpu.memory_space<vmem>>, vector<256x32xf32>
    %1 = arith.truncf %0 : vector<256x32xf32> to vector<256x32xbf16>
    %c0_1 = arith.constant 0 : index
    %c0_2 = arith.constant 0 : index
    %2 = vector.load %arg2[%c0_1, %c0_2] : memref<32x64xbf16, #tpu.memory_space<vmem>>, vector<32x64xbf16>
    %cst = arith.constant dense<0.000000e+00> : vector<256x64xf32>
    %3 = tpu.matmul %1, %2, %cst {dimension_numbers = #tpu.dot_dimension_numbers<[1], [0], [0], [1], [0, 0, 1, 1], [], []>} : vector<256x32xbf16>, vector<32x64xbf16>, vector<256x64xf32> -> vector<256x64xf32>
    %c0_3 = arith.constant 0 : index
    %c0_4 = arith.constant 0 : index
    %4 = vector.load %arg3[%c0_3, %c0_4] : memref<1x64xf32, #tpu.memory_space<vmem>>, vector<1x64xf32>
    %5 = vector.broadcast %4 : vector<1x64xf32> to vector<256x64xf32>
    %6 = arith.addf %3, %5 : vector<256x64xf32>
    %cst_5 = arith.constant 0.000000e+00 : f32
    %7 = vector.broadcast %cst_5 : f32 to vector<256x64xf32>
    %8 = arith.maximumf %6, %7 : vector<256x64xf32>
    %9 = arith.truncf %8 : vector<256x64xf32> to vector<256x64xbf16>
    %c0_6 = arith.constant 0 : index
    %c0_7 = arith.constant 0 : index
    %10 = vector.load %arg4[%c0_6, %c0_7] : memref<64x32xbf16, #tpu.memory_space<vmem>>, vector<64x32xbf16>
    %cst_8 = arith.constant dense<0.000000e+00> : vector<256x32xf32>
    %11 = tpu.matmul %9, %10, %cst_8 {dimension_numbers = #tpu.dot_dimension_numbers<[1], [0], [0], [1], [0, 0, 1, 1], [], []>} : vector<256x64xbf16>, vector<64x32xbf16>, vector<256x32xf32> -> vector<256x32xf32>
    %c0_9 = arith.constant 0 : index
    %c0_10 = arith.constant 0 : index
    %12 = vector.load %arg5[%c0_9, %c0_10] : memref<1x32xf32, #tpu.memory_space<vmem>>, vector<1x32xf32>
    %13 = vector.broadcast %12 : vector<1x32xf32> to vector<256x32xf32>
    %14 = arith.addf %11, %13 : vector<256x32xf32>
    %15 = arith.addf %0, %14 : vector<256x32xf32>
    %c0_11 = arith.constant 0 : index
    %c0_12 = arith.constant 0 : index
    %16 = vector.load %arg6[%c0_11, %c0_12] : memref<256x32xf32, #tpu.memory_space<vmem>>, vector<256x32xf32>
    tpu.vector_store %arg6[%c0_11, %c0_12], %15 {strides = array<i32>} : memref<256x32xf32, #tpu.memory_space<vmem>>, vector<256x32xf32>,
    return
  }
  func.func @transform_0(%arg0: i32) -> (i32, i32) {
    %c0_i32 = arith.constant 0 : i32
    %c0_i32_0 = arith.constant 0 : i32
    return %arg0, %c0_i32 : i32, i32
  }
  func.func @transform_1(%arg0: i32) -> (i32, i32) {
    %c0_i32 = arith.constant 0 : i32
    %c0_i32_0 = arith.constant 0 : i32
    %c0_i32_1 = arith.constant 0 : i32
    return %c0_i32, %c0_i32_0 : i32, i32
  }
  func.func @transform_2(%arg0: i32) -> (i32, i32) {
    %c0_i32 = arith.constant 0 : i32
    %c0_i32_0 = arith.constant 0 : i32
    %c0_i32_1 = arith.constant 0 : i32
    return %c0_i32, %c0_i32_0 : i32, i32
  }
  func.func @transform_3(%arg0: i32) -> (i32, i32) {
    %c0_i32 = arith.constant 0 : i32
    %c0_i32_0 = arith.constant 0 : i32
    %c0_i32_1 = arith.constant 0 : i32
    return %c0_i32, %c0_i32_0 : i32, i32
  }
  func.func @transform_4(%arg0: i32) -> (i32, i32) {
    %c0_i32 = arith.constant 0 : i32
    %c0_i32_0 = arith.constant 0 : i32
    %c0_i32_1 = arith.constant 0 : i32
    return %c0_i32, %c0_i32_0 : i32, i32
  }
  func.func @transform_5(%arg0: i32) -> (i32, i32) {
    %c0_i32 = arith.constant 0 : i32
    %c0_i32_0 = arith.constant 0 : i32
    return %arg0, %c0_i32 : i32, i32
  }
}

module attributes {stable_mosaic.version = 11 : i64} {
  func.func @ffn_residual_kernel(%arg0: i32, %arg1: memref<256x32xf32, #tpu.memory_space<vmem>>, %arg2: memref<32x64xbf16, #tpu.memory_space<vmem>>, %arg3: memref<1x64xf32, #tpu.memory_space<vmem>>, %arg4: memref<64x32xbf16, #tpu.memory_space<vmem>>, %arg5: memref<1x32xf32, #tpu.memory_space<vmem>>, %arg6: memref<256x32xf32, #tpu.memory_space<vmem>>) attributes {dimension_semantics = [#tpu.dimension_semantics<parallel>], iteration_bounds = array<i64: 2>, scalar_prefetch = 0 : i64, scratch_operands = 0 : i64, tpu.core_type = #tpu.core_type<tc>, window_params = [{transform_indices = @transform_0, window_bounds = array<i64: 256, 32>}, {pipeline_mode = #tpu.pipeline_mode<synchronous>, transform_indices = @transform_1, window_bounds = array<i64: 32, 64>}, {pipeline_mode = #tpu.pipeline_mode<synchronous>, transform_indices = @transform_2, window_bounds = array<i64: 1, 64>}, {pipeline_mode = #tpu.pipeline_mode<synchronous>, transform_indices = @transform_3, window_bounds = array<i64: 64, 32>}, {pipeline_mode = #tpu.pipeline_mode<synchronous>, transform_indices = @transform_4, window_bounds = array<i64: 1, 32>}, {transform_indices = @transform_5, window_bounds = array<i64: 256, 32>}]} {
    %c0 = arith.constant 0 : index
    %c0_0 = arith.constant 0 : index
    %0 = vector.load %arg1[%c0, %c0_0] : memref<256x32xf32, #tpu.memory_space<vmem>>, vector<256x32xf32>
    %1 = arith.truncf %0 : vector<256x32xf32> to vector<256x32xbf16>
    %c0_1 = arith.constant 0 : index
    %c0_2 = arith.constant 0 : index
    %2 = vector.load %arg2[%c0_1, %c0_2] : memref<32x64xbf16, #tpu.memory_space<vmem>>, vector<32x64xbf16>
    %cst = arith.constant dense<0.000000e+00> : vector<256x64xf32>
    %3 = tpu.matmul %1, %2, %cst {dimension_numbers = #tpu.dot_dimension_numbers<[1], [0], [0], [1], [0, 0, 1, 1], [], []>} : vector<256x32xbf16>, vector<32x64xbf16>, vector<256x64xf32> -> vector<256x64xf32>
    %c0_3 = arith.constant 0 : index
    %c0_4 = arith.constant 0 : index
    %4 = vector.load %arg3[%c0_3, %c0_4] : memref<1x64xf32, #tpu.memory_space<vmem>>, vector<1x64xf32>
    %5 = vector.broadcast %4 : vector<1x64xf32> to vector<256x64xf32>
    %6 = arith.addf %3, %5 : vector<256x64xf32>
    %cst_5 = arith.constant 0.000000e+00 : f32
    %7 = vector.broadcast %cst_5 : f32 to vector<256x64xf32>
    %8 = arith.maximumf %6, %7 : vector<256x64xf32>
    %9 = arith.truncf %8 : vector<256x64xf32> to vector<256x64xbf16>
    %c0_6 = arith.constant 0 : index
    %c0_7 = arith.constant 0 : index
    %10 = vector.load %arg4[%c0_6, %c0_7] : memref<64x32xbf16, #tpu.memory_space<vmem>>, vector<64x32xbf16>
    %cst_8 = arith.constant dense<0.000000e+00> : vector<256x32xf32>
    %11 = tpu.matmul %9, %10, %cst_8 {dimension_numbers = #tpu.dot_dimension_numbers<[1], [0], [0], [1], [0, 0, 1, 1], [], []>} : vector<256x64xbf16>, vector<64x32xbf16>, vector<256x32xf32> -> vector<256x32xf32>
    %c0_9 = arith.constant 0 : index
    %c0_10 = arith.constant 0 : index
    %12 = vector.load %arg5[%c0_9, %c0_10] : memref<1x32xf32, #tpu.memory_space<vmem>>, vector<1x32xf32>
    %13 = vector.broadcast %12 : vector<1x32xf32> to vector<256x32xf32>
    %14 = arith.addf %11, %13 : vector<256x32xf32>
    %15 = arith.addf %0, %14 : vector<256x32xf32>
    %c0_11 = arith.constant 0 : index
    %c0_12 = arith.constant 0 : index
    %16 = vector.load %arg6[%c0_11, %c0_12] : memref<256x32xf32, #tpu.memory_space<vmem>>, vector<256x32xf32>
    tpu.vector_store %arg6[%c0_11, %c0_12], %15 {strides = array<i32>} : memref<256x32xf32, #tpu.memory_space<vmem>>, vector<256x32xf32>,
    return
  }
  func.func @transform_0(%arg0: i32) -> (i32, i32) {
    %c0_i32 = arith.constant 0 : i32
    %c0_i32_0 = arith.constant 0 : i32
    return %arg0, %c0_i32 : i32, i32
  }
  func.func @transform_1(%arg0: i32) -> (i32, i32) {
    %c0_i32 = arith.constant 0 : i32
    %c0_i32_0 = arith.constant 0 : i32
    %c0_i32_1 = arith.constant 0 : i32
    return %c0_i32, %c0_i32_0 : i32, i32
  }
  func.func @transform_2(%arg0: i32) -> (i32, i32) {
    %c0_i32 = arith.constant 0 : i32
    %c0_i32_0 = arith.constant 0 : i32
    %c0_i32_1 = arith.constant 0 : i32
    return %c0_i32, %c0_i32_0 : i32, i32
  }
  func.func @transform_3(%arg0: i32) -> (i32, i32) {
    %c0_i32 = arith.constant 0 : i32
    %c0_i32_0 = arith.constant 0 : i32
    %c0_i32_1 = arith.constant 0 : i32
    return %c0_i32, %c0_i32_0 : i32, i32
  }
  func.func @transform_4(%arg0: i32) -> (i32, i32) {
    %c0_i32 = arith.constant 0 : i32
    %c0_i32_0 = arith.constant 0 : i32
    %c0_i32_1 = arith.constant 0 : i32
    return %c0_i32, %c0_i32_0 : i32, i32
  }
  func.func @transform_5(%arg0: i32) -> (i32, i32) {
    %c0_i32 = arith.constant 0 : i32
    %c0_i32_0 = arith.constant 0 : i32
    return %arg0, %c0_i32 : i32, i32
  }
}

</mosaic_0001>

<bundles_post_ra>
// kernel: tpu_custom_call.1
= control target key start
LH: loop header
LB: loop body
LE: loop exit
PB: predicated region body
PF: predicated region fallthrough
CT: control target
= control target key end

     0   :  { %s1144_s18 = smov 0   ;;  %s1520_s0 = inlined_call_operand.vmem [shape: f32[512,32], index: 0, kind: input, shape index: {}]   ;;  %s1521_s1 = inlined_call_operand.vmem [shape: bf16[32,64], index: 1, kind: input, shape index: {}]   ;;  %s1522_s2 = inlined_call_operand.vmem [shape: f32[1,64], index: 2, kind: input, shape index: {}]   ;;  %s1523_s3 = inlined_call_operand.vmem [shape: bf16[64,32], index: 3, kind: input, shape index: {}]   ;;  %s1524_s4 = inlined_call_operand.vmem [shape: f32[1,32], index: 4, kind: input, shape index: {}]   ;;  %s1525_s5 = inlined_call_operand.vmem [shape: f32[512,32], index: 5, kind: output, shape index: {}]  }
   0x1 LB: > { %s927_s19 = sadd.s32 4294967295, %s1112_s18   ;;  %p931_p0 = scmp.ge.s32.totalorder %s1112_s18, 1  ;;  %s1112_s18 = sphi %s1144_s18, %s15_s18  }
   0x2   : > { %p188_p1 = scmp.lt.s32.totalorder %s1112_s18, 3 }
   0x4   : > { %p189_p2 = pnand %p931_p0, %p188_p1 }
   0x5   : > { %s932_s22 = sshll.u32 (!%p189_p2), %s927_s19, 5 }
   0x6   : > { %192 = sbr.rel (%p189_p2) target bundleno = 486 (0x1e6), region = 40  ;;  %p217_p3 = scmp.lt.s32.totalorder (!%p189_p2), %s932_s22, 63 }
   0xb   : > { %v1100_v0 = vld [vmem:[%s1521_s1 + $0x8] sm:$0xff]   ;;  %v1101_v1 = vld [vmem:[%s1521_s1] sm:$0xff]   ;;  %v1102_v2 = vld [vmem:[%s1523_s3 + $0x18] sm:$0xff]   ;;  %s1527_s22 = smov (!%p217_p3, %s932_s22), 63  ;;  %vm300_vm0 = vcmask 261120   ;;  %vm597_vm1 = vcmask 523264  }
   0xc   : > { %1016 = vmatprep.subr.bf16.mxu0 %v1100_v0  ;;  %1052 = vmatprep.subr.bf16.mxu1 %v1102_v2  ;;  %s933_s27 = sshll.u32 %s1527_s22, 3  ;;  %v1103_v51 = vld [vmem:[%s1523_s3 + $0x10] sm:$0xff]   ;;  %v1104_v52 = vld [vmem:[%s1523_s3 + $0x8] sm:$0xff]   ;;  %v1105_v53 = vld [vmem:[%s1523_s3] sm:$0xff]  }
   0xd   : > { %1017 = vmatpush3.bf16.msra.mxu0 %v1100_v0  ;;  %1053 = vmatpush3.bf16.msra.mxu1 %v1102_v2  ;;  %s1169_s30 = scalar_lea.vmem %s1520_s0, %s933_s27  ;;  %v1327_v56 = vld [vmem:[%s1522_s2] ss:$0 sm:$0xff]  ;;  %s1388_s19 = scalar_lea.vmem %s1525_s5, %s933_s27 }
   0xe   : > { %1018 = vmatprep.subr.bf16.mxu0 %v1101_v1  ;;  %v1172_v3 = vld [vmem:[%s1169_s30] sm:$0xff]  ;;  %v1175_v4 = vld [vmem:[%s1169_s30 + $0x8] sm:$0xff]  ;;  %v1178_v5 = vld [vmem:[%s1169_s30 + $0x10] sm:$0xff]  ;;  %1054 = vmatprep.subr.bf16.mxu1 %v1103_v51 }
   0xf   : > { %v261_v6 = vpack.c.bf16 %v1175_v4, %v1172_v3  ;;  %v1183_v7 = vld [vmem:[%s1169_s30 + $0x18] sm:$0xff]  ;;  %v1186_v8 = vld [vmem:[%s1169_s30 + $0x20] sm:$0xff]  ;;  %v1189_v9 = vld [vmem:[%s1169_s30 + $0x28] sm:$0xff] }
  0x10   : > { %v262_v10 = vpack.c.bf16 %v1183_v7, %v1178_v5  ;;  %v263_v11 = vpack.c.bf16 %v1189_v9, %v1186_v8  ;;  %v1199_v12 = vld [vmem:[%s1169_s30 + $0x30] sm:$0xff]  ;;  %v1202_v13 = vld [vmem:[%s1169_s30 + $0x38] sm:$0xff]  ;;  %v1205_v14 = vld [vmem:[%s1169_s30 + $0x40] sm:$0xff] }
  0x11   : > { %1019 = vmatpush3.bf16.msra.mxu0 %v1101_v1  ;;  %1020 = vmatprep.mubr.msk.bf16.mxu0 %vm300_vm0, %v261_v6  ;;  %v1208_v15 = vld [vmem:[%s1169_s30 + $0x48] sm:$0xff]  ;;  %v264_v16 = vpack.c.bf16 %v1202_v13, %v1199_v12  ;;  %v1217_v18 = vld [vmem:[%s1169_s30 + $0x50] sm:$0xff]  ;;  %v1220_v19 = vld [vmem:[%s1169_s30 + $0x58] sm:$0xff] }
  0x12   : > { %v265_v17 = vpack.c.bf16 %v1208_v15, %v1205_v14  ;;  %v1223_v20 = vld [vmem:[%s1169_s30 + $0x60] sm:$0xff]  ;;  %v1226_v21 = vld [vmem:[%s1169_s30 + $0x68] sm:$0xff]  ;;  %v266_v22 = vpack.c.bf16 %v1220_v19, %v1217_v18  ;;  %v1235_v24 = vld [vmem:[%s1169_s30 + $0x70] sm:$0xff]  ;;  %1055 = vmatpush3.bf16.msra.mxu1 %v1103_v51 }
  0x13   : > { %v267_v23 = vpack.c.bf16 %v1226_v21, %v1223_v20  ;;  %v1238_v25 = vld [vmem:[%s1169_s30 + $0x78] sm:$0xff]  ;;  %v1241_v26 = vld [vmem:[%s1169_s30 + $0x80] sm:$0xff]  ;;  %v1244_v27 = vld [vmem:[%s1169_s30 + $0x88] sm:$0xff]  ;;  %1056 = vmatprep.subr.bf16.mxu1 %v1104_v52 }
  0x14   : > { %1021 = vmatmul.mubr.msk.bf16.vlgmr.msra.gmra.mxu0 %vm300_vm0, %v262_v10  ;;  %v268_v28 = vpack.c.bf16 %v1238_v25, %v1235_v24  ;;  %v269_v29 = vpack.c.bf16 %v1244_v27, %v1241_v26  ;;  %v1253_v30 = vld [vmem:[%s1169_s30 + $0x90] sm:$0xff]  ;;  %v1256_v31 = vld [vmem:[%s1169_s30 + $0x98] sm:$0xff]  ;;  %v1259_v32 = vld [vmem:[%s1169_s30 + $0xa0] sm:$0xff] }
  0x15   : > { %1024 = vmatprep.mubr.msk.bf16.mxu0 %vm300_vm0, %v263_v11  ;;  %v1262_v33 = vld [vmem:[%s1169_s30 + $0xa8] sm:$0xff]  ;;  %v270_v34 = vpack.c.bf16 %v1256_v31, %v1253_v30  ;;  %v1271_v36 = vld [vmem:[%s1169_s30 + $0xb0] sm:$0xff]  ;;  %v1274_v37 = vld [vmem:[%s1169_s30 + $0xb8] sm:$0xff] }
  0x16   : > { %v271_v35 = vpack.c.bf16 %v1262_v33, %v1259_v32  ;;  %v1277_v38 = vld [vmem:[%s1169_s30 + $0xc0] sm:$0xff]  ;;  %v1280_v39 = vld [vmem:[%s1169_s30 + $0xc8] sm:$0xff]  ;;  %v272_v40 = vpack.c.bf16 %v1274_v37, %v1271_v36  ;;  %v1289_v42 = vld [vmem:[%s1169_s30 + $0xd0] sm:$0xff]  ;;  %1057 = vmatpush3.bf16.msra.mxu1 %v1104_v52 }
  0x17   : > { %v273_v41 = vpack.c.bf16 %v1280_v39, %v1277_v38  ;;  %v1292_v43 = vld [vmem:[%s1169_s30 + $0xd8] sm:$0xff]  ;;  %v1295_v44 = vld [vmem:[%s1169_s30 + $0xe0] sm:$0xff]  ;;  %v1298_v45 = vld [vmem:[%s1169_s30 + $0xe8] sm:$0xff]  ;;  %1058 = vmatprep.subr.bf16.mxu1 %v1105_v53 }
  0x18   : > { %v274_v46 = vpack.c.bf16 %v1292_v43, %v1289_v42  ;;  %v275_v47 = vpack.c.bf16 %v1298_v45, %v1295_v44  ;;  %v1307_v48 = vld [vmem:[%s1169_s30 + $0xf0] sm:$0xff]  ;;  %v1310_v49 = vld [vmem:[%s1169_s30 + $0xf8] sm:$0xff] }
  0x19   : > { %v276_v50 = vpack.c.bf16 %v1310_v49, %v1307_v48 }
  0x1a   : > { %1059 = vmatpush3.bf16.msra.mxu1 %v1105_v53 }
  0x1c   : > { %1025 = vmatmul.mubr.msk.bf16.gmra.mxu0 %vm300_vm0, %v264_v16 }
  0x1d   : > { %1028 = vmatprep.mubr.msk.bf16.mxu0 %vm300_vm0, %v265_v17 }
  0x24   : > { %1029 = vmatmul.mubr.msk.bf16.gmra.mxu0 %vm300_vm0, %v266_v22 }
  0x25   : > { %1032 = vmatprep.mubr.msk.bf16.mxu0 %vm300_vm0, %v267_v23 }
  0x2c   : > { %1033 = vmatmul.mubr.msk.bf16.gmra.mxu0 %vm300_vm0, %v268_v28 }
  0x2d   : > { %1036 = vmatprep.mubr.msk.bf16.mxu0 %vm300_vm0, %v269_v29 }
  0x34   : > { %1037 = vmatmul.mubr.msk.bf16.gmra.mxu0 %vm300_vm0, %v270_v34 }
  0x35   : > { %1040 = vmatprep.mubr.msk.bf16.mxu0 %vm300_vm0, %v271_v35 }
  0x3c   : > { %1041 = vmatmul.mubr.msk.bf16.gmra.mxu0 %vm300_vm0, %v272_v40 }
  0x3d   : > { %1044 = vmatprep.mubr.msk.bf16.mxu0 %vm300_vm0, %v273_v41 }
  0x44   : > { %1045 = vmatmul.mubr.msk.bf16.gmra.mxu0 %vm300_vm0, %v274_v46 }
  0x45   : > { %1048 = vmatprep.mubr.msk.bf16.mxu0 %vm300_vm0, %v275_v47 }
  0x4c   : > { %1049 = vmatmul.mubr.msk.bf16.gmra.mxu0 %vm300_vm0, %v276_v50 }
  0xd4   : > { %v1022_v54 = vpop.f32.mrf.mxu0 }
  0xd5   : > { %v392_v60 = vadd.f32 %v1022_v54, %v1327_v56 }
  0xd6   : > { %v383_v55 = vpop.f32.mrf.mxu0 }
  0xd7   : > { %v384_v58 = vadd.f32 %v1327_v56, %v383_v55  ;;  %v512_v6 = vmax.f32 %v392_v60, 0.0 }
  0xd8   : > { %v1023_v57 = vpop.f32.mrf.mxu0 }
  0xd9   : > { %v395_v59 = vadd.f32 %v1023_v57, %v1327_v56  ;;  %v510_v1 = vmax.f32 %v384_v58, 0.0 }
  0xda   : > { %v386_v61 = vpop.f32.mrf.mxu0 }
  0xdb   : > { %v387_v62 = vadd.f32 %v1327_v56, %v386_v61  ;;  %v513_v63 = vmax.f32 %v395_v59, 0.0 }
  0xdc   : > { %v1026_v0 = vpop.f32.mrf.mxu0 }
  0xdd   : > { %v511_v2 = vmax.f32 %v387_v62, 0.0  ;;  %v543_v16 = vpack.c.bf16 %v513_v63, %v512_v6  ;;  %v408_v28 = vadd.f32 %v1026_v0, %v1327_v56 }
  0xde   : > { %v399_v10 = vpop.f32.mrf.mxu0 }
  0xdf   : > { %v542_v11 = vpack.c.bf16 %v511_v2, %v510_v1  ;;  %v400_v22 = vadd.f32 %v1327_v56, %v399_v10  ;;  %v516_v47 = vmax.f32 %v408_v28, 0.0 }
  0xe0   : > { %v1027_v17 = vpop.f32.mrf.mxu0 }
  0xe1   : > { %v411_v23 = vadd.f32 %v1027_v17, %v1327_v56  ;;  %1060 = vmatprep.mubr.msk.bf16.mxu1 %vm597_vm1, %v542_v11  ;;  %v514_v41 = vmax.f32 %v400_v22, 0.0 }
  0xe2   : > { %v402_v29 = vpop.f32.mrf.mxu0  ;;  %1061 = vmatmul.mubr.msk.bf16.vlgmr.msra.gmra.mxu1 %vm597_vm1, %v543_v16 }
  0xe3   : > { %v403_v34 = vadd.f32 %v1327_v56, %v402_v29  ;;  %v517_v35 = vmax.f32 %v411_v23, 0.0 }
  0xe4   : > { %v1030_v40 = vpop.f32.mrf.mxu0 }
  0xe5   : > { %v515_v46 = vmax.f32 %v403_v34, 0.0  ;;  %v545_v52 = vpack.c.bf16 %v517_v35, %v516_v47  ;;  %v424_v57 = vadd.f32 %v1030_v40, %v1327_v56 }
  0xe6   : > { %v415_v50 = vpop.f32.mrf.mxu0 }
  0xe7   : > { %v544_v51 = vpack.c.bf16 %v515_v46, %v514_v41  ;;  %v416_v54 = vadd.f32 %v1327_v56, %v415_v50  ;;  %v520_v0 = vmax.f32 %v424_v57, 0.0 }
  0xe8   : > { %v1031_v53 = vpop.f32.mrf.mxu0 }
  0xe9   : > { %v427_v55 = vadd.f32 %v1031_v53, %v1327_v56  ;;  %1064 = vmatprep.mubr.msk.bf16.mxu1 %vm597_vm1, %v544_v51  ;;  %v518_v62 = vmax.f32 %v416_v54, 0.0 }
  0xea   : > { %v418_v58 = vpop.f32.mrf.mxu0  ;;  %1065 = vmatmul.mubr.msk.bf16.gmra.mxu1 %vm597_vm1, %v545_v52 }
  0xeb   : > { %v419_v59 = vadd.f32 %v1327_v56, %v418_v58  ;;  %v521_v60 = vmax.f32 %v427_v55, 0.0 }
  0xec   : > { %v1034_v61 = vpop.f32.mrf.mxu0 }
  0xed   : > { %v519_v63 = vmax.f32 %v419_v59, 0.0  ;;  %v547_v6 = vpack.c.bf16 %v521_v60, %v520_v0  ;;  %v440_v17 = vadd.f32 %v1034_v61, %v1327_v56 }
  0xee   : > { %v431_v1 = vpop.f32.mrf.mxu0 }
  0xef   : > { %v546_v2 = vpack.c.bf16 %v519_v63, %v518_v62  ;;  %v432_v11 = vadd.f32 %v1327_v56, %v431_v1  ;;  %v524_v40 = vmax.f32 %v440_v17, 0.0 }
  0xf0   : > { %v1035_v10 = vpop.f32.mrf.mxu0 }
  0xf1   : > { %v443_v16 = vadd.f32 %v1035_v10, %v1327_v56  ;;  %1068 = vmatprep.mubr.msk.bf16.mxu1 %vm597_vm1, %v546_v2  ;;  %v522_v34 = vmax.f32 %v432_v11, 0.0 }
  0xf2   : > { %v434_v22 = vpop.f32.mrf.mxu0  ;;  %1069 = vmatmul.mubr.msk.bf16.gmra.mxu1 %vm597_vm1, %v547_v6 }
  0xf3   : > { %v435_v23 = vadd.f32 %v1327_v56, %v434_v22  ;;  %v525_v28 = vmax.f32 %v443_v16, 0.0 }
  0xf4   : > { %v1038_v29 = vpop.f32.mrf.mxu0 }
  0xf5   : > { %v523_v35 = vmax.f32 %v435_v23, 0.0  ;;  %v549_v47 = vpack.c.bf16 %v525_v28, %v524_v40  ;;  %v456_v53 = vadd.f32 %v1038_v29, %v1327_v56 }
  0xf6   : > { %v447_v41 = vpop.f32.mrf.mxu0 }
  0xf7   : > { %v548_v46 = vpack.c.bf16 %v523_v35, %v522_v34  ;;  %v448_v51 = vadd.f32 %v1327_v56, %v447_v41  ;;  %v528_v61 = vmax.f32 %v456_v53, 0.0 }
  0xf8   : > { %v1039_v50 = vpop.f32.mrf.mxu0 }
  0xf9   : > { %v459_v52 = vadd.f32 %v1039_v50, %v1327_v56  ;;  %1072 = vmatprep.mubr.msk.bf16.mxu1 %vm597_vm1, %v548_v46  ;;  %v526_v59 = vmax.f32 %v448_v51, 0.0 }
  0xfa   : > { %v450_v54 = vpop.f32.mrf.mxu0  ;;  %1073 = vmatmul.mubr.msk.bf16.gmra.mxu1 %vm597_vm1, %v549_v47 }
  0xfb   : > { %v451_v55 = vadd.f32 %v1327_v56, %v450_v54  ;;  %v529_v57 = vmax.f32 %v459_v52, 0.0 }
  0xfc   : > { %v1042_v58 = vpop.f32.mrf.mxu0 }
  0xfd   : > { %v527_v60 = vmax.f32 %v451_v55, 0.0  ;;  %v551_v0 = vpack.c.bf16 %v529_v57, %v528_v61  ;;  %v472_v10 = vadd.f32 %v1042_v58, %v1327_v56 }
  0xfe   : > { %v463_v62 = vpop.f32.mrf.mxu0 }
  0xff   : > { %v550_v63 = vpack.c.bf16 %v527_v60, %v526_v59  ;;  %v464_v2 = vadd.f32 %v1327_v56, %v463_v62  ;;  %v532_v29 = vmax.f32 %v472_v10, 0.0 }
 0x100   : > { %v1043_v1 = vpop.f32.mrf.mxu0 }
 0x101   : > { %v475_v6 = vadd.f32 %v1043_v1, %v1327_v56  ;;  %1076 = vmatprep.mubr.msk.bf16.mxu1 %vm597_vm1, %v550_v63  ;;  %v530_v23 = vmax.f32 %v464_v2, 0.0 }
 0x102   : > { %v466_v11 = vpop.f32.mrf.mxu0  ;;  %1077 = vmatmul.mubr.msk.bf16.gmra.mxu1 %vm597_vm1, %v551_v0 }
 0x103   : > { %v467_v16 = vadd.f32 %v1327_v56, %v466_v11  ;;  %v533_v17 = vmax.f32 %v475_v6, 0.0 }
 0x104   : > { %v1046_v22 = vpop.f32.mrf.mxu0 }
 0x105   : > { %v531_v28 = vmax.f32 %v467_v16, 0.0  ;;  %v553_v40 = vpack.c.bf16 %v533_v17, %v532_v29  ;;  %v488_v50 = vadd.f32 %v1046_v22, %v1327_v56 }
 0x106   : > { %v479_v34 = vpop.f32.mrf.mxu0 }
 0x107   : > { %v552_v35 = vpack.c.bf16 %v531_v28, %v530_v23  ;;  %v480_v46 = vadd.f32 %v1327_v56, %v479_v34  ;;  %v536_v58 = vmax.f32 %v488_v50, 0.0  ;;  %v1380_v28 = vld [vmem:[%s1524_s4] ss:$0 sm:$0xff] }
 0x108   : > { %v1047_v41 = vpop.f32.mrf.mxu0 }
 0x109   : > { %v491_v47 = vadd.f32 %v1047_v41, %v1327_v56  ;;  %1080 = vmatprep.mubr.msk.bf16.mxu1 %vm597_vm1, %v552_v35  ;;  %v534_v55 = vmax.f32 %v480_v46, 0.0 }
 0x10a   : > { %v482_v51 = vpop.f32.mrf.mxu0  ;;  %1081 = vmatmul.mubr.msk.bf16.gmra.mxu1 %vm597_vm1, %v553_v40 }
 0x10b   : > { %v483_v52 = vadd.f32 %v1327_v56, %v482_v51  ;;  %v537_v53 = vmax.f32 %v491_v47, 0.0 }
 0x10c   : > { %v1050_v54 = vpop.f32.mrf.mxu0 }
 0x10d   : > { %v535_v57 = vmax.f32 %v483_v52, 0.0  ;;  %v555_v61 = vpack.c.bf16 %v537_v53, %v536_v58  ;;  %v504_v1 = vadd.f32 %v1050_v54, %v1327_v56 }
 0x10e   : > { %v495_v59 = vpop.f32.mrf.mxu0 }
 0x10f   : > { %v554_v60 = vpack.c.bf16 %v535_v57, %v534_v55  ;;  %v496_v63 = vadd.f32 %v1327_v56, %v495_v59  ;;  %v540_v17 = vmax.f32 %v504_v1, 0.0 }
 0x110   : > { %v1051_v62 = vpop.f32.mrf.mxu0 }
 0x111   : > { %v507_v0 = vadd.f32 %v1051_v62, %v1327_v56  ;;  %1084 = vmatprep.mubr.msk.bf16.mxu1 %vm597_vm1, %v554_v60  ;;  %v538_v11 = vmax.f32 %v496_v63, 0.0 }
 0x112   : > { %v498_v2 = vpop.f32.mrf.mxu0  ;;  %1085 = vmatmul.mubr.msk.bf16.gmra.mxu1 %vm597_vm1, %v555_v61 }
 0x113   : > { %v499_v6 = vadd.f32 %v1327_v56, %v498_v2  ;;  %v541_v10 = vmax.f32 %v507_v0, 0.0 }
 0x115   : > { %v539_v16 = vmax.f32 %v499_v6, 0.0  ;;  %v557_v23 = vpack.c.bf16 %v541_v10, %v540_v17 }
 0x117   : > { %v556_v22 = vpack.c.bf16 %v539_v16, %v538_v11 }
 0x119   : > { %1088 = vmatprep.mubr.msk.bf16.mxu1 %vm597_vm1, %v556_v22 }
 0x11a   : > { %1089 = vmatmul.mubr.msk.bf16.gmra.mxu1 %vm597_vm1, %v557_v23 }
 0x1a2   : > { %v1062_v29 = vpop.f32.mrf.mxu1 }
 0x1a3   : > { %v689_v34 = vadd.f32 %v1062_v29, %v1380_v28 }
 0x1a4   : > { %v680_v56 = vpop.f32.mrf.mxu1 }
 0x1a5   : > { %v809_v35 = vadd.f32 %v689_v34, %v1178_v5  ;;  %v681_v40 = vadd.f32 %v1380_v28, %v680_v56 }
 0x1a6   : > { %v1063_v41 = vpop.f32.mrf.mxu1 }
 0x1a7   : > { %841 = vst.msk [vmem:[%s1388_s19 + $0x10] sm:$0xff] %vm300_vm0, %v809_v35  ;;  %v807_v46 = vadd.f32 %v681_v40, %v1172_v3  ;;  %v692_v47 = vadd.f32 %v1063_v41, %v1380_v28 }
 0x1a8   : > { %v683_v50 = vpop.f32.mrf.mxu1 }
 0x1a9   : > { %839 = vst.msk [vmem:[%s1388_s19] sm:$0xff] %vm300_vm0, %v807_v46  ;;  %v810_v51 = vadd.f32 %v692_v47, %v1183_v7  ;;  %v684_v52 = vadd.f32 %v1380_v28, %v683_v50 }
 0x1aa   : > { %v1066_v53 = vpop.f32.mrf.mxu1 }
 0x1ab   : > { %842 = vst.msk [vmem:[%s1388_s19 + $0x18] sm:$0xff] %vm300_vm0, %v810_v51  ;;  %v808_v5 = vadd.f32 %v684_v52, %v1175_v4  ;;  %v705_v54 = vadd.f32 %v1066_v53, %v1380_v28 }
 0x1ac   : > { %v696_v55 = vpop.f32.mrf.mxu1 }
 0x1ad   : > { %840 = vst.msk [vmem:[%s1388_s19 + $0x8] sm:$0xff] %vm300_vm0, %v808_v5  ;;  %v813_v3 = vadd.f32 %v705_v54, %v1199_v12  ;;  %v697_v57 = vadd.f32 %v1380_v28, %v696_v55 }
 0x1ae   : > { %v1067_v58 = vpop.f32.mrf.mxu1 }
 0x1af   : > { %845 = vst.msk [vmem:[%s1388_s19 + $0x30] sm:$0xff] %vm300_vm0, %v813_v3  ;;  %v811_v7 = vadd.f32 %v697_v57, %v1186_v8  ;;  %v708_v59 = vadd.f32 %v1067_v58, %v1380_v28 }
 0x1b0   : > { %v699_v60 = vpop.f32.mrf.mxu1 }
 0x1b1   : > { %843 = vst.msk [vmem:[%s1388_s19 + $0x20] sm:$0xff] %vm300_vm0, %v811_v7  ;;  %v814_v4 = vadd.f32 %v708_v59, %v1202_v13  ;;  %v700_v61 = vadd.f32 %v1380_v28, %v699_v60 }
 0x1b2   : > { %v1070_v62 = vpop.f32.mrf.mxu1 }
 0x1b3   : > { %846 = vst.msk [vmem:[%s1388_s19 + $0x38] sm:$0xff] %vm300_vm0, %v814_v4  ;;  %v812_v12 = vadd.f32 %v700_v61, %v1189_v9  ;;  %v721_v63 = vadd.f32 %v1070_v62, %v1380_v28 }
 0x1b4   : > { %v712_v0 = vpop.f32.mrf.mxu1 }
 0x1b5   : > { %844 = vst.msk [vmem:[%s1388_s19 + $0x28] sm:$0xff] %vm300_vm0, %v812_v12  ;;  %v817_v8 = vadd.f32 %v721_v63, %v1217_v18  ;;  %v713_v1 = vadd.f32 %v1380_v28, %v712_v0 }
 0x1b6   : > { %v1071_v2 = vpop.f32.mrf.mxu1 }
 0x1b7   : > { %849 = vst.msk [vmem:[%s1388_s19 + $0x50] sm:$0xff] %vm300_vm0, %v817_v8  ;;  %v815_v13 = vadd.f32 %v713_v1, %v1205_v14  ;;  %v724_v6 = vadd.f32 %v1071_v2, %v1380_v28 }
 0x1b8   : > { %v715_v10 = vpop.f32.mrf.mxu1 }
 0x1b9   : > { %847 = vst.msk [vmem:[%s1388_s19 + $0x40] sm:$0xff] %vm300_vm0, %v815_v13  ;;  %v818_v9 = vadd.f32 %v724_v6, %v1220_v19  ;;  %v716_v11 = vadd.f32 %v1380_v28, %v715_v10 }
 0x1ba   : > { %v1074_v16 = vpop.f32.mrf.mxu1 }
 0x1bb   : > { %850 = vst.msk [vmem:[%s1388_s19 + $0x58] sm:$0xff] %vm300_vm0, %v818_v9  ;;  %v816_v18 = vadd.f32 %v716_v11, %v1208_v15  ;;  %v737_v17 = vadd.f32 %v1074_v16, %v1380_v28 }
 0x1bc   : > { %v728_v22 = vpop.f32.mrf.mxu1 }
 0x1bd   : > { %848 = vst.msk [vmem:[%s1388_s19 + $0x48] sm:$0xff] %vm300_vm0, %v816_v18  ;;  %v821_v14 = vadd.f32 %v737_v17, %v1235_v24  ;;  %v729_v23 = vadd.f32 %v1380_v28, %v728_v22 }
 0x1be   : > { %v1075_v29 = vpop.f32.mrf.mxu1 }
 0x1bf   : > { %853 = vst.msk [vmem:[%s1388_s19 + $0x70] sm:$0xff] %vm300_vm0, %v821_v14  ;;  %v819_v19 = vadd.f32 %v729_v23, %v1223_v20  ;;  %v740_v34 = vadd.f32 %v1075_v29, %v1380_v28 }
 0x1c0   : > { %v731_v56 = vpop.f32.mrf.mxu1 }
 0x1c1   : > { %851 = vst.msk [vmem:[%s1388_s19 + $0x60] sm:$0xff] %vm300_vm0, %v819_v19  ;;  %v822_v15 = vadd.f32 %v740_v34, %v1238_v25  ;;  %v732_v35 = vadd.f32 %v1380_v28, %v731_v56 }
 0x1c2   : > { %v1078_v40 = vpop.f32.mrf.mxu1 }
 0x1c3   : > { %854 = vst.msk [vmem:[%s1388_s19 + $0x78] sm:$0xff] %vm300_vm0, %v822_v15  ;;  %v820_v24 = vadd.f32 %v732_v35, %v1226_v21  ;;  %v753_v41 = vadd.f32 %v1078_v40, %v1380_v28 }
 0x1c4   : > { %v744_v46 = vpop.f32.mrf.mxu1 }
 0x1c5   : > { %852 = vst.msk [vmem:[%s1388_s19 + $0x68] sm:$0xff] %vm300_vm0, %v820_v24  ;;  %v825_v20 = vadd.f32 %v753_v41, %v1253_v30  ;;  %v745_v47 = vadd.f32 %v1380_v28, %v744_v46 }
 0x1c6   : > { %v1079_v50 = vpop.f32.mrf.mxu1 }
 0x1c7   : > { %857 = vst.msk [vmem:[%s1388_s19 + $0x90] sm:$0xff] %vm300_vm0, %v825_v20  ;;  %v823_v25 = vadd.f32 %v745_v47, %v1241_v26  ;;  %v756_v51 = vadd.f32 %v1079_v50, %v1380_v28 }
 0x1c8   : > { %v747_v52 = vpop.f32.mrf.mxu1 }
 0x1c9   : > { %855 = vst.msk [vmem:[%s1388_s19 + $0x80] sm:$0xff] %vm300_vm0, %v823_v25  ;;  %v826_v21 = vadd.f32 %v756_v51, %v1256_v31  ;;  %v748_v53 = vadd.f32 %v1380_v28, %v747_v52 }
 0x1ca   : > { %v1082_v5 = vpop.f32.mrf.mxu1 }
 0x1cb   : > { %858 = vst.msk [vmem:[%s1388_s19 + $0x98] sm:$0xff] %vm300_vm0, %v826_v21  ;;  %v824_v30 = vadd.f32 %v748_v53, %v1244_v27  ;;  %v769_v54 = vadd.f32 %v1082_v5, %v1380_v28 }
 0x1cc   : > { %v760_v55 = vpop.f32.mrf.mxu1 }
 0x1cd   : > { %856 = vst.msk [vmem:[%s1388_s19 + $0x88] sm:$0xff] %vm300_vm0, %v824_v30  ;;  %v829_v26 = vadd.f32 %v769_v54, %v1271_v36  ;;  %v761_v3 = vadd.f32 %v1380_v28, %v760_v55 }
 0x1ce   : > { %v1083_v57 = vpop.f32.mrf.mxu1 }
 0x1cf   : > { %861 = vst.msk [vmem:[%s1388_s19 + $0xb0] sm:$0xff] %vm300_vm0, %v829_v26  ;;  %v827_v31 = vadd.f32 %v761_v3, %v1259_v32  ;;  %v772_v58 = vadd.f32 %v1083_v57, %v1380_v28 }
 0x1d0   : > { %v763_v7 = vpop.f32.mrf.mxu1 }
 0x1d1   : > { %859 = vst.msk [vmem:[%s1388_s19 + $0xa0] sm:$0xff] %vm300_vm0, %v827_v31  ;;  %v830_v27 = vadd.f32 %v772_v58, %v1274_v37  ;;  %v764_v59 = vadd.f32 %v1380_v28, %v763_v7 }
 0x1d2   : > { %v1086_v60 = vpop.f32.mrf.mxu1 }
 0x1d3   : > { %862 = vst.msk [vmem:[%s1388_s19 + $0xb8] sm:$0xff] %vm300_vm0, %v830_v27  ;;  %v828_v36 = vadd.f32 %v764_v59, %v1262_v33  ;;  %v785_v4 = vadd.f32 %v1086_v60, %v1380_v28 }
 0x1d4   : > { %v776_v61 = vpop.f32.mrf.mxu1 }
 0x1d5   : > { %860 = vst.msk [vmem:[%s1388_s19 + $0xa8] sm:$0xff] %vm300_vm0, %v828_v36  ;;  %v833_v32 = vadd.f32 %v785_v4, %v1289_v42  ;;  %v777_v62 = vadd.f32 %v1380_v28, %v776_v61 }
 0x1d6   : > { %v1087_v12 = vpop.f32.mrf.mxu1 }
 0x1d7   : > { %865 = vst.msk [vmem:[%s1388_s19 + $0xd0] sm:$0xff] %vm300_vm0, %v833_v32  ;;  %v831_v37 = vadd.f32 %v777_v62, %v1277_v38  ;;  %v788_v63 = vadd.f32 %v1087_v12, %v1380_v28 }
 0x1d8   : > { %v779_v0 = vpop.f32.mrf.mxu1 }
 0x1d9   : > { %863 = vst.msk [vmem:[%s1388_s19 + $0xc0] sm:$0xff] %vm300_vm0, %v831_v37  ;;  %v834_v33 = vadd.f32 %v788_v63, %v1292_v43  ;;  %v780_v8 = vadd.f32 %v1380_v28, %v779_v0 }
 0x1da   : > { %v1090_v1 = vpop.f32.mrf.mxu1 }
 0x1db   : > { %866 = vst.msk [vmem:[%s1388_s19 + $0xd8] sm:$0xff] %vm300_vm0, %v834_v33  ;;  %v832_v42 = vadd.f32 %v780_v8, %v1280_v39  ;;  %v801_v2 = vadd.f32 %v1090_v1, %v1380_v28 }
 0x1dc   : > { %v792_v38 = vpop.f32.mrf.mxu1 }
 0x1dd   : > { %864 = vst.msk [vmem:[%s1388_s19 + $0xc8] sm:$0xff] %vm300_vm0, %v832_v42  ;;  %v837_v13 = vadd.f32 %v801_v2, %v1307_v48  ;;  %v793_v6 = vadd.f32 %v1380_v28, %v792_v38 }
 0x1de   : > { %v1091_v10 = vpop.f32.mrf.mxu1 }
 0x1df   : > { %869 = vst.msk [vmem:[%s1388_s19 + $0xf0] sm:$0xff] %vm300_vm0, %v837_v13  ;;  %v835_v43 = vadd.f32 %v793_v6, %v1295_v44  ;;  %v804_v9 = vadd.f32 %v1091_v10, %v1380_v28 }
 0x1e0   : > { %v795_v11 = vpop.f32.mrf.mxu1 }
 0x1e1   : > { %867 = vst.msk [vmem:[%s1388_s19 + $0xe0] sm:$0xff] %vm300_vm0, %v835_v43  ;;  %v838_v39 = vadd.f32 %v804_v9, %v1310_v49  ;;  %v796_v16 = vadd.f32 %v1380_v28, %v795_v11 }
 0x1e3   : > { %870 = vst.msk [vmem:[%s1388_s19 + $0xf8] sm:$0xff] %vm300_vm0, %v838_v39  ;;  %v836_v48 = vadd.f32 %v796_v16, %v1298_v45 }
 0x1e5   : > { %868 = vst.msk [vmem:[%s1388_s19 + $0xe8] sm:$0xff] %vm300_vm0, %v836_v48 }
 0x1e6 PF: > { %s15_s18 = sadd.s32 1, %s1112_s18  }
 0x1e7   : > { %p12_p4 = scmp.ge.s32.totalorder %s15_s18, 4  }
 0x1e9   :  { %14 = sbr.rel (!%p12_p4) target bundleno = 1 (0x1), region = 70 }

// kernel: tpu_custom_call.1
= control target key start
LH: loop header
LB: loop body
LE: loop exit
PB: predicated region body
PF: predicated region fallthrough
CT: control target
= control target key end

     0   :  { %s1144_s18 = smov 0   ;;  %s1520_s0 = inlined_call_operand.vmem [shape: f32[512,32], index: 0, kind: input, shape index: {}]   ;;  %s1521_s1 = inlined_call_operand.vmem [shape: bf16[32,64], index: 1, kind: input, shape index: {}]   ;;  %s1522_s2 = inlined_call_operand.vmem [shape: f32[1,64], index: 2, kind: input, shape index: {}]   ;;  %s1523_s3 = inlined_call_operand.vmem [shape: bf16[64,32], index: 3, kind: input, shape index: {}]   ;;  %s1524_s4 = inlined_call_operand.vmem [shape: f32[1,32], index: 4, kind: input, shape index: {}]   ;;  %s1525_s5 = inlined_call_operand.vmem [shape: f32[512,32], index: 5, kind: output, shape index: {}]  }
   0x1 LB: > { %s927_s19 = sadd.s32 4294967295, %s1112_s18   ;;  %p931_p0 = scmp.ge.s32.totalorder %s1112_s18, 1  ;;  %s1112_s18 = sphi %s1144_s18, %s15_s18  }
   0x2   : > { %p188_p1 = scmp.lt.s32.totalorder %s1112_s18, 3 }
   0x4   : > { %p189_p2 = pnand %p931_p0, %p188_p1 }
   0x5   : > { %s932_s22 = sshll.u32 (!%p189_p2), %s927_s19, 5 }
   0x6   : > { %192 = sbr.rel (%p189_p2) target bundleno = 486 (0x1e6), region = 40  ;;  %p217_p3 = scmp.lt.s32.totalorder (!%p189_p2), %s932_s22, 63 }
   0xb   : > { %v1100_v0 = vld [vmem:[%s1521_s1 + $0x8] sm:$0xff]   ;;  %v1101_v1 = vld [vmem:[%s1521_s1] sm:$0xff]   ;;  %v1102_v2 = vld [vmem:[%s1523_s3 + $0x18] sm:$0xff]   ;;  %s1527_s22 = smov (!%p217_p3, %s932_s22), 63  ;;  %vm300_vm0 = vcmask 261120   ;;  %vm597_vm1 = vcmask 523264  }
   0xc   : > { %1016 = vmatprep.subr.bf16.mxu0 %v1100_v0  ;;  %1052 = vmatprep.subr.bf16.mxu1 %v1102_v2  ;;  %s933_s27 = sshll.u32 %s1527_s22, 3  ;;  %v1103_v51 = vld [vmem:[%s1523_s3 + $0x10] sm:$0xff]   ;;  %v1104_v52 = vld [vmem:[%s1523_s3 + $0x8] sm:$0xff]   ;;  %v1105_v53 = vld [vmem:[%s1523_s3] sm:$0xff]  }
   0xd   : > { %1017 = vmatpush3.bf16.msra.mxu0 %v1100_v0  ;;  %1053 = vmatpush3.bf16.msra.mxu1 %v1102_v2  ;;  %s1169_s30 = scalar_lea.vmem %s1520_s0, %s933_s27  ;;  %v1327_v56 = vld [vmem:[%s1522_s2] ss:$0 sm:$0xff]  ;;  %s1388_s19 = scalar_lea.vmem %s1525_s5, %s933_s27 }
   0xe   : > { %1018 = vmatprep.subr.bf16.mxu0 %v1101_v1  ;;  %v1172_v3 = vld [vmem:[%s1169_s30] sm:$0xff]  ;;  %v1175_v4 = vld [vmem:[%s1169_s30 + $0x8] sm:$0xff]  ;;  %v1178_v5 = vld [vmem:[%s1169_s30 + $0x10] sm:$0xff]  ;;  %1054 = vmatprep.subr.bf16.mxu1 %v1103_v51 }
   0xf   : > { %v261_v6 = vpack.c.bf16 %v1175_v4, %v1172_v3  ;;  %v1183_v7 = vld [vmem:[%s1169_s30 + $0x18] sm:$0xff]  ;;  %v1186_v8 = vld [vmem:[%s1169_s30 + $0x20] sm:$0xff]  ;;  %v1189_v9 = vld [vmem:[%s1169_s30 + $0x28] sm:$0xff] }
  0x10   : > { %v262_v10 = vpack.c.bf16 %v1183_v7, %v1178_v5  ;;  %v263_v11 = vpack.c.bf16 %v1189_v9, %v1186_v8  ;;  %v1199_v12 = vld [vmem:[%s1169_s30 + $0x30] sm:$0xff]  ;;  %v1202_v13 = vld [vmem:[%s1169_s30 + $0x38] sm:$0xff]  ;;  %v1205_v14 = vld [vmem:[%s1169_s30 + $0x40] sm:$0xff] }
  0x11   : > { %1019 = vmatpush3.bf16.msra.mxu0 %v1101_v1  ;;  %1020 = vmatprep.mubr.msk.bf16.mxu0 %vm300_vm0, %v261_v6  ;;  %v1208_v15 = vld [vmem:[%s1169_s30 + $0x48] sm:$0xff]  ;;  %v264_v16 = vpack.c.bf16 %v1202_v13, %v1199_v12  ;;  %v1217_v18 = vld [vmem:[%s1169_s30 + $0x50] sm:$0xff]  ;;  %v1220_v19 = vld [vmem:[%s1169_s30 + $0x58] sm:$0xff] }
  0x12   : > { %v265_v17 = vpack.c.bf16 %v1208_v15, %v1205_v14  ;;  %v1223_v20 = vld [vmem:[%s1169_s30 + $0x60] sm:$0xff]  ;;  %v1226_v21 = vld [vmem:[%s1169_s30 + $0x68] sm:$0xff]  ;;  %v266_v22 = vpack.c.bf16 %v1220_v19, %v1217_v18  ;;  %v1235_v24 = vld [vmem:[%s1169_s30 + $0x70] sm:$0xff]  ;;  %1055 = vmatpush3.bf16.msra.mxu1 %v1103_v51 }
  0x13   : > { %v267_v23 = vpack.c.bf16 %v1226_v21, %v1223_v20  ;;  %v1238_v25 = vld [vmem:[%s1169_s30 + $0x78] sm:$0xff]  ;;  %v1241_v26 = vld [vmem:[%s1169_s30 + $0x80] sm:$0xff]  ;;  %v1244_v27 = vld [vmem:[%s1169_s30 + $0x88] sm:$0xff]  ;;  %1056 = vmatprep.subr.bf16.mxu1 %v1104_v52 }
  0x14   : > { %1021 = vmatmul.mubr.msk.bf16.vlgmr.msra.gmra.mxu0 %vm300_vm0, %v262_v10  ;;  %v268_v28 = vpack.c.bf16 %v1238_v25, %v1235_v24  ;;  %v269_v29 = vpack.c.bf16 %v1244_v27, %v1241_v26  ;;  %v1253_v30 = vld [vmem:[%s1169_s30 + $0x90] sm:$0xff]  ;;  %v1256_v31 = vld [vmem:[%s1169_s30 + $0x98] sm:$0xff]  ;;  %v1259_v32 = vld [vmem:[%s1169_s30 + $0xa0] sm:$0xff] }
  0x15   : > { %1024 = vmatprep.mubr.msk.bf16.mxu0 %vm300_vm0, %v263_v11  ;;  %v1262_v33 = vld [vmem:[%s1169_s30 + $0xa8] sm:$0xff]  ;;  %v270_v34 = vpack.c.bf16 %v1256_v31, %v1253_v30  ;;  %v1271_v36 = vld [vmem:[%s1169_s30 + $0xb0] sm:$0xff]  ;;  %v1274_v37 = vld [vmem:[%s1169_s30 + $0xb8] sm:$0xff] }
  0x16   : > { %v271_v35 = vpack.c.bf16 %v1262_v33, %v1259_v32  ;;  %v1277_v38 = vld [vmem:[%s1169_s30 + $0xc0] sm:$0xff]  ;;  %v1280_v39 = vld [vmem:[%s1169_s30 + $0xc8] sm:$0xff]  ;;  %v272_v40 = vpack.c.bf16 %v1274_v37, %v1271_v36  ;;  %v1289_v42 = vld [vmem:[%s1169_s30 + $0xd0] sm:$0xff]  ;;  %1057 = vmatpush3.bf16.msra.mxu1 %v1104_v52 }
  0x17   : > { %v273_v41 = vpack.c.bf16 %v1280_v39, %v1277_v38  ;;  %v1292_v43 = vld [vmem:[%s1169_s30 + $0xd8] sm:$0xff]  ;;  %v1295_v44 = vld [vmem:[%s1169_s30 + $0xe0] sm:$0xff]  ;;  %v1298_v45 = vld [vmem:[%s1169_s30 + $0xe8] sm:$0xff]  ;;  %1058 = vmatprep.subr.bf16.mxu1 %v1105_v53 }
  0x18   : > { %v274_v46 = vpack.c.bf16 %v1292_v43, %v1289_v42  ;;  %v275_v47 = vpack.c.bf16 %v1298_v45, %v1295_v44  ;;  %v1307_v48 = vld [vmem:[%s1169_s30 + $0xf0] sm:$0xff]  ;;  %v1310_v49 = vld [vmem:[%s1169_s30 + $0xf8] sm:$0xff] }
  0x19   : > { %v276_v50 = vpack.c.bf16 %v1310_v49, %v1307_v48 }
  0x1a   : > { %1059 = vmatpush3.bf16.msra.mxu1 %v1105_v53 }
  0x1c   : > { %1025 = vmatmul.mubr.msk.bf16.gmra.mxu0 %vm300_vm0, %v264_v16 }
  0x1d   : > { %1028 = vmatprep.mubr.msk.bf16.mxu0 %vm300_vm0, %v265_v17 }
  0x24   : > { %1029 = vmatmul.mubr.msk.bf16.gmra.mxu0 %vm300_vm0, %v266_v22 }
  0x25   : > { %1032 = vmatprep.mubr.msk.bf16.mxu0 %vm300_vm0, %v267_v23 }
  0x2c   : > { %1033 = vmatmul.mubr.msk.bf16.gmra.mxu0 %vm300_vm0, %v268_v28 }
  0x2d   : > { %1036 = vmatprep.mubr.msk.bf16.mxu0 %vm300_vm0, %v269_v29 }
  0x34   : > { %1037 = vmatmul.mubr.msk.bf16.gmra.mxu0 %vm300_vm0, %v270_v34 }
  0x35   : > { %1040 = vmatprep.mubr.msk.bf16.mxu0 %vm300_vm0, %v271_v35 }
  0x3c   : > { %1041 = vmatmul.mubr.msk.bf16.gmra.mxu0 %vm300_vm0, %v272_v40 }
  0x3d   : > { %1044 = vmatprep.mubr.msk.bf16.mxu0 %vm300_vm0, %v273_v41 }
  0x44   : > { %1045 = vmatmul.mubr.msk.bf16.gmra.mxu0 %vm300_vm0, %v274_v46 }
  0x45   : > { %1048 = vmatprep.mubr.msk.bf16.mxu0 %vm300_vm0, %v275_v47 }
  0x4c   : > { %1049 = vmatmul.mubr.msk.bf16.gmra.mxu0 %vm300_vm0, %v276_v50 }
  0xd4   : > { %v1022_v54 = vpop.f32.mrf.mxu0 }
  0xd5   : > { %v392_v60 = vadd.f32 %v1022_v54, %v1327_v56 }
  0xd6   : > { %v383_v55 = vpop.f32.mrf.mxu0 }
  0xd7   : > { %v384_v58 = vadd.f32 %v1327_v56, %v383_v55  ;;  %v512_v6 = vmax.f32 %v392_v60, 0.0 }
  0xd8   : > { %v1023_v57 = vpop.f32.mrf.mxu0 }
  0xd9   : > { %v395_v59 = vadd.f32 %v1023_v57, %v1327_v56  ;;  %v510_v1 = vmax.f32 %v384_v58, 0.0 }
  0xda   : > { %v386_v61 = vpop.f32.mrf.mxu0 }
  0xdb   : > { %v387_v62 = vadd.f32 %v1327_v56, %v386_v61  ;;  %v513_v63 = vmax.f32 %v395_v59, 0.0 }
  0xdc   : > { %v1026_v0 = vpop.f32.mrf.mxu0 }
  0xdd   : > { %v511_v2 = vmax.f32 %v387_v62, 0.0  ;;  %v543_v16 = vpack.c.bf16 %v513_v63, %v512_v6  ;;  %v408_v28 = vadd.f32 %v1026_v0, %v1327_v56 }
  0xde   : > { %v399_v10 = vpop.f32.mrf.mxu0 }
  0xdf   : > { %v542_v11 = vpack.c.bf16 %v511_v2, %v510_v1  ;;  %v400_v22 = vadd.f32 %v1327_v56, %v399_v10  ;;  %v516_v47 = vmax.f32 %v408_v28, 0.0 }
  0xe0   : > { %v1027_v17 = vpop.f32.mrf.mxu0 }
  0xe1   : > { %v411_v23 = vadd.f32 %v1027_v17, %v1327_v56  ;;  %1060 = vmatprep.mubr.msk.bf16.mxu1 %vm597_vm1, %v542_v11  ;;  %v514_v41 = vmax.f32 %v400_v22, 0.0 }
  0xe2   : > { %v402_v29 = vpop.f32.mrf.mxu0  ;;  %1061 = vmatmul.mubr.msk.bf16.vlgmr.msra.gmra.mxu1 %vm597_vm1, %v543_v16 }
  0xe3   : > { %v403_v34 = vadd.f32 %v1327_v56, %v402_v29  ;;  %v517_v35 = vmax.f32 %v411_v23, 0.0 }
  0xe4   : > { %v1030_v40 = vpop.f32.mrf.mxu0 }
  0xe5   : > { %v515_v46 = vmax.f32 %v403_v34, 0.0  ;;  %v545_v52 = vpack.c.bf16 %v517_v35, %v516_v47  ;;  %v424_v57 = vadd.f32 %v1030_v40, %v1327_v56 }
  0xe6   : > { %v415_v50 = vpop.f32.mrf.mxu0 }
  0xe7   : > { %v544_v51 = vpack.c.bf16 %v515_v46, %v514_v41  ;;  %v416_v54 = vadd.f32 %v1327_v56, %v415_v50  ;;  %v520_v0 = vmax.f32 %v424_v57, 0.0 }
  0xe8   : > { %v1031_v53 = vpop.f32.mrf.mxu0 }
  0xe9   : > { %v427_v55 = vadd.f32 %v1031_v53, %v1327_v56  ;;  %1064 = vmatprep.mubr.msk.bf16.mxu1 %vm597_vm1, %v544_v51  ;;  %v518_v62 = vmax.f32 %v416_v54, 0.0 }
  0xea   : > { %v418_v58 = vpop.f32.mrf.mxu0  ;;  %1065 = vmatmul.mubr.msk.bf16.gmra.mxu1 %vm597_vm1, %v545_v52 }
  0xeb   : > { %v419_v59 = vadd.f32 %v1327_v56, %v418_v58  ;;  %v521_v60 = vmax.f32 %v427_v55, 0.0 }
  0xec   : > { %v1034_v61 = vpop.f32.mrf.mxu0 }
  0xed   : > { %v519_v63 = vmax.f32 %v419_v59, 0.0  ;;  %v547_v6 = vpack.c.bf16 %v521_v60, %v520_v0  ;;  %v440_v17 = vadd.f32 %v1034_v61, %v1327_v56 }
  0xee   : > { %v431_v1 = vpop.f32.mrf.mxu0 }
  0xef   : > { %v546_v2 = vpack.c.bf16 %v519_v63, %v518_v62  ;;  %v432_v11 = vadd.f32 %v1327_v56, %v431_v1  ;;  %v524_v40 = vmax.f32 %v440_v17, 0.0 }
  0xf0   : > { %v1035_v10 = vpop.f32.mrf.mxu0 }
  0xf1   : > { %v443_v16 = vadd.f32 %v1035_v10, %v1327_v56  ;;  %1068 = vmatprep.mubr.msk.bf16.mxu1 %vm597_vm1, %v546_v2  ;;  %v522_v34 = vmax.f32 %v432_v11, 0.0 }
  0xf2   : > { %v434_v22 = vpop.f32.mrf.mxu0  ;;  %1069 = vmatmul.mubr.msk.bf16.gmra.mxu1 %vm597_vm1, %v547_v6 }
  0xf3   : > { %v435_v23 = vadd.f32 %v1327_v56, %v434_v22  ;;  %v525_v28 = vmax.f32 %v443_v16, 0.0 }
  0xf4   : > { %v1038_v29 = vpop.f32.mrf.mxu0 }
  0xf5   : > { %v523_v35 = vmax.f32 %v435_v23, 0.0  ;;  %v549_v47 = vpack.c.bf16 %v525_v28, %v524_v40  ;;  %v456_v53 = vadd.f32 %v1038_v29, %v1327_v56 }
  0xf6   : > { %v447_v41 = vpop.f32.mrf.mxu0 }
  0xf7   : > { %v548_v46 = vpack.c.bf16 %v523_v35, %v522_v34  ;;  %v448_v51 = vadd.f32 %v1327_v56, %v447_v41  ;;  %v528_v61 = vmax.f32 %v456_v53, 0.0 }
  0xf8   : > { %v1039_v50 = vpop.f32.mrf.mxu0 }
  0xf9   : > { %v459_v52 = vadd.f32 %v1039_v50, %v1327_v56  ;;  %1072 = vmatprep.mubr.msk.bf16.mxu1 %vm597_vm1, %v548_v46  ;;  %v526_v59 = vmax.f32 %v448_v51, 0.0 }
  0xfa   : > { %v450_v54 = vpop.f32.mrf.mxu0  ;;  %1073 = vmatmul.mubr.msk.bf16.gmra.mxu1 %vm597_vm1, %v549_v47 }
  0xfb   : > { %v451_v55 = vadd.f32 %v1327_v56, %v450_v54  ;;  %v529_v57 = vmax.f32 %v459_v52, 0.0 }
  0xfc   : > { %v1042_v58 = vpop.f32.mrf.mxu0 }
  0xfd   : > { %v527_v60 = vmax.f32 %v451_v55, 0.0  ;;  %v551_v0 = vpack.c.bf16 %v529_v57, %v528_v61  ;;  %v472_v10 = vadd.f32 %v1042_v58, %v1327_v56 }
  0xfe   : > { %v463_v62 = vpop.f32.mrf.mxu0 }
  0xff   : > { %v550_v63 = vpack.c.bf16 %v527_v60, %v526_v59  ;;  %v464_v2 = vadd.f32 %v1327_v56, %v463_v62  ;;  %v532_v29 = vmax.f32 %v472_v10, 0.0 }
 0x100   : > { %v1043_v1 = vpop.f32.mrf.mxu0 }
 0x101   : > { %v475_v6 = vadd.f32 %v1043_v1, %v1327_v56  ;;  %1076 = vmatprep.mubr.msk.bf16.mxu1 %vm597_vm1, %v550_v63  ;;  %v530_v23 = vmax.f32 %v464_v2, 0.0 }
 0x102   : > { %v466_v11 = vpop.f32.mrf.mxu0  ;;  %1077 = vmatmul.mubr.msk.bf16.gmra.mxu1 %vm597_vm1, %v551_v0 }
 0x103   : > { %v467_v16 = vadd.f32 %v1327_v56, %v466_v11  ;;  %v533_v17 = vmax.f32 %v475_v6, 0.0 }
 0x104   : > { %v1046_v22 = vpop.f32.mrf.mxu0 }
 0x105   : > { %v531_v28 = vmax.f32 %v467_v16, 0.0  ;;  %v553_v40 = vpack.c.bf16 %v533_v17, %v532_v29  ;;  %v488_v50 = vadd.f32 %v1046_v22, %v1327_v56 }
 0x106   : > { %v479_v34 = vpop.f32.mrf.mxu0 }
 0x107   : > { %v552_v35 = vpack.c.bf16 %v531_v28, %v530_v23  ;;  %v480_v46 = vadd.f32 %v1327_v56, %v479_v34  ;;  %v536_v58 = vmax.f32 %v488_v50, 0.0  ;;  %v1380_v28 = vld [vmem:[%s1524_s4] ss:$0 sm:$0xff] }
 0x108   : > { %v1047_v41 = vpop.f32.mrf.mxu0 }
 0x109   : > { %v491_v47 = vadd.f32 %v1047_v41, %v1327_v56  ;;  %1080 = vmatprep.mubr.msk.bf16.mxu1 %vm597_vm1, %v552_v35  ;;  %v534_v55 = vmax.f32 %v480_v46, 0.0 }
 0x10a   : > { %v482_v51 = vpop.f32.mrf.mxu0  ;;  %1081 = vmatmul.mubr.msk.bf16.gmra.mxu1 %vm597_vm1, %v553_v40 }
 0x10b   : > { %v483_v52 = vadd.f32 %v1327_v56, %v482_v51  ;;  %v537_v53 = vmax.f32 %v491_v47, 0.0 }
 0x10c   : > { %v1050_v54 = vpop.f32.mrf.mxu0 }
 0x10d   : > { %v535_v57 = vmax.f32 %v483_v52, 0.0  ;;  %v555_v61 = vpack.c.bf16 %v537_v53, %v536_v58  ;;  %v504_v1 = vadd.f32 %v1050_v54, %v1327_v56 }
 0x10e   : > { %v495_v59 = vpop.f32.mrf.mxu0 }
 0x10f   : > { %v554_v60 = vpack.c.bf16 %v535_v57, %v534_v55  ;;  %v496_v63 = vadd.f32 %v1327_v56, %v495_v59  ;;  %v540_v17 = vmax.f32 %v504_v1, 0.0 }
 0x110   : > { %v1051_v62 = vpop.f32.mrf.mxu0 }
 0x111   : > { %v507_v0 = vadd.f32 %v1051_v62, %v1327_v56  ;;  %1084 = vmatprep.mubr.msk.bf16.mxu1 %vm597_vm1, %v554_v60  ;;  %v538_v11 = vmax.f32 %v496_v63, 0.0 }
 0x112   : > { %v498_v2 = vpop.f32.mrf.mxu0  ;;  %1085 = vmatmul.mubr.msk.bf16.gmra.mxu1 %vm597_vm1, %v555_v61 }
 0x113   : > { %v499_v6 = vadd.f32 %v1327_v56, %v498_v2  ;;  %v541_v10 = vmax.f32 %v507_v0, 0.0 }
 0x115   : > { %v539_v16 = vmax.f32 %v499_v6, 0.0  ;;  %v557_v23 = vpack.c.bf16 %v541_v10, %v540_v17 }
 0x117   : > { %v556_v22 = vpack.c.bf16 %v539_v16, %v538_v11 }
 0x119   : > { %1088 = vmatprep.mubr.msk.bf16.mxu1 %vm597_vm1, %v556_v22 }
 0x11a   : > { %1089 = vmatmul.mubr.msk.bf16.gmra.mxu1 %vm597_vm1, %v557_v23 }
 0x1a2   : > { %v1062_v29 = vpop.f32.mrf.mxu1 }
 0x1a3   : > { %v689_v34 = vadd.f32 %v1062_v29, %v1380_v28 }
 0x1a4   : > { %v680_v56 = vpop.f32.mrf.mxu1 }
 0x1a5   : > { %v809_v35 = vadd.f32 %v689_v34, %v1178_v5  ;;  %v681_v40 = vadd.f32 %v1380_v28, %v680_v56 }
 0x1a6   : > { %v1063_v41 = vpop.f32.mrf.mxu1 }
 0x1a7   : > { %841 = vst.msk [vmem:[%s1388_s19 + $0x10] sm:$0xff] %vm300_vm0, %v809_v35  ;;  %v807_v46 = vadd.f32 %v681_v40, %v1172_v3  ;;  %v692_v47 = vadd.f32 %v1063_v41, %v1380_v28 }
 0x1a8   : > { %v683_v50 = vpop.f32.mrf.mxu1 }
 0x1a9   : > { %839 = vst.msk [vmem:[%s1388_s19] sm:$0xff] %vm300_vm0, %v807_v46  ;;  %v810_v51 = vadd.f32 %v692_v47, %v1183_v7  ;;  %v684_v52 = vadd.f32 %v1380_v28, %v683_v50 }
 0x1aa   : > { %v1066_v53 = vpop.f32.mrf.mxu1 }
 0x1ab   : > { %842 = vst.msk [vmem:[%s1388_s19 + $0x18] sm:$0xff] %vm300_vm0, %v810_v51  ;;  %v808_v5 = vadd.f32 %v684_v52, %v1175_v4  ;;  %v705_v54 = vadd.f32 %v1066_v53, %v1380_v28 }
 0x1ac   : > { %v696_v55 = vpop.f32.mrf.mxu1 }
 0x1ad   : > { %840 = vst.msk [vmem:[%s1388_s19 + $0x8] sm:$0xff] %vm300_vm0, %v808_v5  ;;  %v813_v3 = vadd.f32 %v705_v54, %v1199_v12  ;;  %v697_v57 = vadd.f32 %v1380_v28, %v696_v55 }
 0x1ae   : > { %v1067_v58 = vpop.f32.mrf.mxu1 }
 0x1af   : > { %845 = vst.msk [vmem:[%s1388_s19 + $0x30] sm:$0xff] %vm300_vm0, %v813_v3  ;;  %v811_v7 = vadd.f32 %v697_v57, %v1186_v8  ;;  %v708_v59 = vadd.f32 %v1067_v58, %v1380_v28 }
 0x1b0   : > { %v699_v60 = vpop.f32.mrf.mxu1 }
 0x1b1   : > { %843 = vst.msk [vmem:[%s1388_s19 + $0x20] sm:$0xff] %vm300_vm0, %v811_v7  ;;  %v814_v4 = vadd.f32 %v708_v59, %v1202_v13  ;;  %v700_v61 = vadd.f32 %v1380_v28, %v699_v60 }
 0x1b2   : > { %v1070_v62 = vpop.f32.mrf.mxu1 }
 0x1b3   : > { %846 = vst.msk [vmem:[%s1388_s19 + $0x38] sm:$0xff] %vm300_vm0, %v814_v4  ;;  %v812_v12 = vadd.f32 %v700_v61, %v1189_v9  ;;  %v721_v63 = vadd.f32 %v1070_v62, %v1380_v28 }
 0x1b4   : > { %v712_v0 = vpop.f32.mrf.mxu1 }
 0x1b5   : > { %844 = vst.msk [vmem:[%s1388_s19 + $0x28] sm:$0xff] %vm300_vm0, %v812_v12  ;;  %v817_v8 = vadd.f32 %v721_v63, %v1217_v18  ;;  %v713_v1 = vadd.f32 %v1380_v28, %v712_v0 }
 0x1b6   : > { %v1071_v2 = vpop.f32.mrf.mxu1 }
 0x1b7   : > { %849 = vst.msk [vmem:[%s1388_s19 + $0x50] sm:$0xff] %vm300_vm0, %v817_v8  ;;  %v815_v13 = vadd.f32 %v713_v1, %v1205_v14  ;;  %v724_v6 = vadd.f32 %v1071_v2, %v1380_v28 }
 0x1b8   : > { %v715_v10 = vpop.f32.mrf.mxu1 }
 0x1b9   : > { %847 = vst.msk [vmem:[%s1388_s19 + $0x40] sm:$0xff] %vm300_vm0, %v815_v13  ;;  %v818_v9 = vadd.f32 %v724_v6, %v1220_v19  ;;  %v716_v11 = vadd.f32 %v1380_v28, %v715_v10 }
 0x1ba   : > { %v1074_v16 = vpop.f32.mrf.mxu1 }
 0x1bb   : > { %850 = vst.msk [vmem:[%s1388_s19 + $0x58] sm:$0xff] %vm300_vm0, %v818_v9  ;;  %v816_v18 = vadd.f32 %v716_v11, %v1208_v15  ;;  %v737_v17 = vadd.f32 %v1074_v16, %v1380_v28 }
 0x1bc   : > { %v728_v22 = vpop.f32.mrf.mxu1 }
 0x1bd   : > { %848 = vst.msk [vmem:[%s1388_s19 + $0x48] sm:$0xff] %vm300_vm0, %v816_v18  ;;  %v821_v14 = vadd.f32 %v737_v17, %v1235_v24  ;;  %v729_v23 = vadd.f32 %v1380_v28, %v728_v22 }
 0x1be   : > { %v1075_v29 = vpop.f32.mrf.mxu1 }
 0x1bf   : > { %853 = vst.msk [vmem:[%s1388_s19 + $0x70] sm:$0xff] %vm300_vm0, %v821_v14  ;;  %v819_v19 = vadd.f32 %v729_v23, %v1223_v20  ;;  %v740_v34 = vadd.f32 %v1075_v29, %v1380_v28 }
 0x1c0   : > { %v731_v56 = vpop.f32.mrf.mxu1 }
 0x1c1   : > { %851 = vst.msk [vmem:[%s1388_s19 + $0x60] sm:$0xff] %vm300_vm0, %v819_v19  ;;  %v822_v15 = vadd.f32 %v740_v34, %v1238_v25  ;;  %v732_v35 = vadd.f32 %v1380_v28, %v731_v56 }
 0x1c2   : > { %v1078_v40 = vpop.f32.mrf.mxu1 }
 0x1c3   : > { %854 = vst.msk [vmem:[%s1388_s19 + $0x78] sm:$0xff] %vm300_vm0, %v822_v15  ;;  %v820_v24 = vadd.f32 %v732_v35, %v1226_v21  ;;  %v753_v41 = vadd.f32 %v1078_v40, %v1380_v28 }
 0x1c4   : > { %v744_v46 = vpop.f32.mrf.mxu1 }
 0x1c5   : > { %852 = vst.msk [vmem:[%s1388_s19 + $0x68] sm:$0xff] %vm300_vm0, %v820_v24  ;;  %v825_v20 = vadd.f32 %v753_v41, %v1253_v30  ;;  %v745_v47 = vadd.f32 %v1380_v28, %v744_v46 }
 0x1c6   : > { %v1079_v50 = vpop.f32.mrf.mxu1 }
 0x1c7   : > { %857 = vst.msk [vmem:[%s1388_s19 + $0x90] sm:$0xff] %vm300_vm0, %v825_v20  ;;  %v823_v25 = vadd.f32 %v745_v47, %v1241_v26  ;;  %v756_v51 = vadd.f32 %v1079_v50, %v1380_v28 }
 0x1c8   : > { %v747_v52 = vpop.f32.mrf.mxu1 }
 0x1c9   : > { %855 = vst.msk [vmem:[%s1388_s19 + $0x80] sm:$0xff] %vm300_vm0, %v823_v25  ;;  %v826_v21 = vadd.f32 %v756_v51, %v1256_v31  ;;  %v748_v53 = vadd.f32 %v1380_v28, %v747_v52 }
 0x1ca   : > { %v1082_v5 = vpop.f32.mrf.mxu1 }
 0x1cb   : > { %858 = vst.msk [vmem:[%s1388_s19 + $0x98] sm:$0xff] %vm300_vm0, %v826_v21  ;;  %v824_v30 = vadd.f32 %v748_v53, %v1244_v27  ;;  %v769_v54 = vadd.f32 %v1082_v5, %v1380_v28 }
 0x1cc   : > { %v760_v55 = vpop.f32.mrf.mxu1 }
 0x1cd   : > { %856 = vst.msk [vmem:[%s1388_s19 + $0x88] sm:$0xff] %vm300_vm0, %v824_v30  ;;  %v829_v26 = vadd.f32 %v769_v54, %v1271_v36  ;;  %v761_v3 = vadd.f32 %v1380_v28, %v760_v55 }
 0x1ce   : > { %v1083_v57 = vpop.f32.mrf.mxu1 }
 0x1cf   : > { %861 = vst.msk [vmem:[%s1388_s19 + $0xb0] sm:$0xff] %vm300_vm0, %v829_v26  ;;  %v827_v31 = vadd.f32 %v761_v3, %v1259_v32  ;;  %v772_v58 = vadd.f32 %v1083_v57, %v1380_v28 }
 0x1d0   : > { %v763_v7 = vpop.f32.mrf.mxu1 }
 0x1d1   : > { %859 = vst.msk [vmem:[%s1388_s19 + $0xa0] sm:$0xff] %vm300_vm0, %v827_v31  ;;  %v830_v27 = vadd.f32 %v772_v58, %v1274_v37  ;;  %v764_v59 = vadd.f32 %v1380_v28, %v763_v7 }
 0x1d2   : > { %v1086_v60 = vpop.f32.mrf.mxu1 }
 0x1d3   : > { %862 = vst.msk [vmem:[%s1388_s19 + $0xb8] sm:$0xff] %vm300_vm0, %v830_v27  ;;  %v828_v36 = vadd.f32 %v764_v59, %v1262_v33  ;;  %v785_v4 = vadd.f32 %v1086_v60, %v1380_v28 }
 0x1d4   : > { %v776_v61 = vpop.f32.mrf.mxu1 }
 0x1d5   : > { %860 = vst.msk [vmem:[%s1388_s19 + $0xa8] sm:$0xff] %vm300_vm0, %v828_v36  ;;  %v833_v32 = vadd.f32 %v785_v4, %v1289_v42  ;;  %v777_v62 = vadd.f32 %v1380_v28, %v776_v61 }
 0x1d6   : > { %v1087_v12 = vpop.f32.mrf.mxu1 }
 0x1d7   : > { %865 = vst.msk [vmem:[%s1388_s19 + $0xd0] sm:$0xff] %vm300_vm0, %v833_v32  ;;  %v831_v37 = vadd.f32 %v777_v62, %v1277_v38  ;;  %v788_v63 = vadd.f32 %v1087_v12, %v1380_v28 }
 0x1d8   : > { %v779_v0 = vpop.f32.mrf.mxu1 }
 0x1d9   : > { %863 = vst.msk [vmem:[%s1388_s19 + $0xc0] sm:$0xff] %vm300_vm0, %v831_v37  ;;  %v834_v33 = vadd.f32 %v788_v63, %v1292_v43  ;;  %v780_v8 = vadd.f32 %v1380_v28, %v779_v0 }
 0x1da   : > { %v1090_v1 = vpop.f32.mrf.mxu1 }
 0x1db   : > { %866 = vst.msk [vmem:[%s1388_s19 + $0xd8] sm:$0xff] %vm300_vm0, %v834_v33  ;;  %v832_v42 = vadd.f32 %v780_v8, %v1280_v39  ;;  %v801_v2 = vadd.f32 %v1090_v1, %v1380_v28 }
 0x1dc   : > { %v792_v38 = vpop.f32.mrf.mxu1 }
 0x1dd   : > { %864 = vst.msk [vmem:[%s1388_s19 + $0xc8] sm:$0xff] %vm300_vm0, %v832_v42  ;;  %v837_v13 = vadd.f32 %v801_v2, %v1307_v48  ;;  %v793_v6 = vadd.f32 %v1380_v28, %v792_v38 }
 0x1de   : > { %v1091_v10 = vpop.f32.mrf.mxu1 }
 0x1df   : > { %869 = vst.msk [vmem:[%s1388_s19 + $0xf0] sm:$0xff] %vm300_vm0, %v837_v13  ;;  %v835_v43 = vadd.f32 %v793_v6, %v1295_v44  ;;  %v804_v9 = vadd.f32 %v1091_v10, %v1380_v28 }
 0x1e0   : > { %v795_v11 = vpop.f32.mrf.mxu1 }
 0x1e1   : > { %867 = vst.msk [vmem:[%s1388_s19 + $0xe0] sm:$0xff] %vm300_vm0, %v835_v43  ;;  %v838_v39 = vadd.f32 %v804_v9, %v1310_v49  ;;  %v796_v16 = vadd.f32 %v1380_v28, %v795_v11 }
 0x1e3   : > { %870 = vst.msk [vmem:[%s1388_s19 + $0xf8] sm:$0xff] %vm300_vm0, %v838_v39  ;;  %v836_v48 = vadd.f32 %v796_v16, %v1298_v45 }
 0x1e5   : > { %868 = vst.msk [vmem:[%s1388_s19 + $0xe8] sm:$0xff] %vm300_vm0, %v836_v48 }
 0x1e6 PF: > { %s15_s18 = sadd.s32 1, %s1112_s18  }
 0x1e7   : > { %p12_p4 = scmp.ge.s32.totalorder %s15_s18, 4  }
 0x1e9   :  { %14 = sbr.rel (!%p12_p4) target bundleno = 1 (0x1), region = 70 }

</bundles_post_ra>
